<compile_context>
chip_gen: v6e
topology: v6e:2x2x1
jax: 0.10.0
libtpu: 0.0.40
codegen_flags: <defaults>
</compile_context>

<pallas_src>
import jax
import jax.numpy as jnp
from jax.experimental import pallas as pl
from jax.experimental.pallas import tpu as pltpu


def _fused_affine_kernel(xt_ref, a_ref, b_ref, ot_ref):
    """ot = A @ xt + b : one MXU contraction per pixel tile, bias add on VPU."""
    ot_ref[...] = (
        jnp.dot(
            a_ref[...],                       # (O, K)  resident 15x15 operator
            xt_ref[...],                      # (K, tm) streaming pixel tile
            preferred_element_type=jnp.float32,
            precision=jax.lax.Precision.HIGHEST,
        )
        + b_ref[...]                          # (O, 1) -> broadcast over lanes
    )


def _fused_affine(xt, a, b_col, *, tile_m=65536):
    """xt: (K, M), a: (O, K), b_col: (O, 1) -> (O, M).

    Grid-tiled over M (lane axis).  No padding / slicing: Pallas masks the ragged
    edge block, which is safe because the op is column-independent.
    tile_m=65536 keeps 2x(in+out) buffers ~= 15.7 MiB (fits v5e/v6e/v7x); v6e/v5e
    could push higher but gains past ~2% step overhead are nil.
    """
    k_dim, m = xt.shape
    o_dim, k2 = a.shape
    assert k_dim == k2, (k_dim, k2)

    tm = m if m <= tile_m else tile_m         # full-dim block for small M, else 65536

    return pl.pallas_call(
        _fused_affine_kernel,
        out_shape=jax.ShapeDtypeStruct((o_dim, m), jnp.float32),
        grid=(pl.cdiv(m, tm),),
        in_specs=[
            pl.BlockSpec((k_dim, tm), lambda i: (0, i)),     # pixel tiles stream
            pl.BlockSpec((o_dim, k_dim), lambda i: (0, 0)),  # 15x15 operator resident
            pl.BlockSpec((o_dim, 1), lambda i: (0, 0)),      # fused bias resident
        ],
        out_specs=pl.BlockSpec((o_dim, tm), lambda i: (0, i)),
        compiler_params=pltpu.CompilerParams(
            dimension_semantics=("parallel",),               # shards across v7x TCs
            vmem_limit_bytes=32 * 1024 * 1024,
        ),
    )(xt, a, b_col)


def init_params(key):
    """Deterministic params matching ConvModel.__init__ shapes."""
    k1, k2, k3, k4, k5, k6 = jax.random.split(key, 6)
    w1 = jax.random.normal(k1, (3, 3, 1, 1), jnp.float32) * 0.3   # conv1.weight
    b1 = jax.random.normal(k2, (3,), jnp.float32) * 0.1           # conv1.bias
    w2 = jax.random.normal(k3, (3, 3, 1, 1), jnp.float32) * 0.3   # conv2.weight
    b2 = jax.random.normal(k4, (3,), jnp.float32) * 0.1           # conv2.bias
    wl = jax.random.normal(k5, (5, 5), jnp.float32) * 0.3         # linear.weight (out,in)
    bl = jax.random.normal(k6, (5,), jnp.float32) * 0.1           # linear.bias
    return w1, b1, w2, b2, wl, bl


def _fold_params(params):
    """Exact algebraic fold of linear(conv2(conv1(x))) into one 15x15 affine."""
    w1, b1, w2, b2, wl, bl = params
    w1m = w1[:, :, 0, 0]                       # (Cout, Cin)
    w2m = w2[:, :, 0, 0]
    w12 = w2m @ w1m                            # fused channel mix   (3, 3)
    b12 = w2m @ b1 + b2                        # fused channel bias  (3,)
    c = w12.shape[0]
    w_out, w_in = wl.shape
    # A[o*Wout + p, c*Win + w] = w12[o, c] * wl[p, w]
    a = jnp.einsum("oc,pw->opcw", w12, wl).reshape(c * w_out, c * w_in)
    # b_full[o*Wout + p] = b12[o] * sum_w wl[p, w] + bl[p]
    b_full = (b12[:, None] * jnp.sum(wl, axis=1)[None, :] + bl[None, :]).reshape(-1)
    return a, b_full[:, None]                  # (15, 15), (15, 1)


@jax.jit
def conv_model_forward(x, params):
    """NCHW module interface.  For large N*H prefer the slab form (_fused_affine)
    to avoid the two transpose HBM passes."""
    n, c, h, w = x.shape
    a, b_col = _fold_params(params)
    # lane-dense slab: features (C*W) on sublanes, pixels (N*H) on lanes
    xt = jnp.transpose(x, (1, 3, 0, 2)).reshape(c * w, n * h)
    ot = _fused_affine(xt, a, b_col)                            # (C*W, N*H)
    return jnp.transpose(ot.reshape(c, w, n, h), (2, 0, 3, 1))  # back to NCHW


def conv_model_reference(x, params):
    """Pure-jnp reference of the PyTorch forward (unfused)."""
    w1, b1, w2, b2, wl, bl = params
    hp = jax.lax.Precision.HIGHEST
    y = jnp.einsum("oc,nchw->nohw", w1[:, :, 0, 0], x, precision=hp) \
        + b1[None, :, None, None]
    y = jnp.einsum("oc,nchw->nohw", w2[:, :, 0, 0], y, precision=hp) \
        + b2[None, :, None, None]
    z = jnp.einsum("nchw,ow->ncho", y, wl, precision=hp) + bl[None, None, None, :]
    return z


if __name__ == "__main__":
    key = jax.random.PRNGKey(0)
    kx, kp = jax.random.split(key)
    # N=2, C=3 (required by Conv2d(3,3,1)), H=4, W=5 (required by Linear(5,5))
    x = jax.random.normal(kx, (2, 3, 4, 5), jnp.float32)
    params = init_params(kp)

    out = jax.block_until_ready(conv_model_forward(x, params))
    ref = conv_model_reference(x, params)

    assert out.shape == (2, 3, 4, 5), out.shape
    assert jnp.allclose(out, ref, atol=1e-4, rtol=1e-4), (
        float(jnp.max(jnp.abs(out - ref)))
    )

    # Also exercise the multi-tile + ragged-edge (no-pad) grid path with a small
    # forced tile so the masked edge block is covered by the test.
    a_f, b_f = _fold_params(params)
    xt_big = jax.random.normal(kp, (15, 1000), jnp.float32)
    got = jax.block_until_ready(_fused_affine(xt_big, a_f, b_f, tile_m=256))
    want = jnp.dot(a_f, xt_big, precision=jax.lax.Precision.HIGHEST) + b_f
    assert jnp.allclose(got, want, atol=1e-4, rtol=1e-4), (
        float(jnp.max(jnp.abs(got - want)))
    )

    print("KERNEL_OK")
</pallas_src>

<mosaic_0001>
module attributes {stable_mosaic.version = 11 : i64} {
  func.func @_fused_affine_kernel(%arg0: i32, %arg1: memref<15x8xf32, #tpu.memory_space<vmem>>, %arg2: memref<15x15xf32, #tpu.memory_space<vmem>>, %arg3: memref<15x1xf32, #tpu.memory_space<vmem>>, %arg4: memref<15x8xf32, #tpu.memory_space<vmem>>) attributes {dimension_semantics = [#tpu.dimension_semantics<parallel>], iteration_bounds = array<i64: 1>, scalar_prefetch = 0 : i64, scratch_operands = 0 : i64, tpu.core_type = #tpu.core_type<tc>, window_params = [{transform_indices = @transform_0, window_bounds = array<i64: 15, 8>}, {pipeline_mode = #tpu.pipeline_mode<synchronous>, transform_indices = @transform_1, window_bounds = array<i64: 15, 15>}, {pipeline_mode = #tpu.pipeline_mode<synchronous>, transform_indices = @transform_2, window_bounds = array<i64: 15, 1>}, {transform_indices = @transform_3, window_bounds = array<i64: 15, 8>}]} {
    %c0 = arith.constant 0 : index
    %c0_0 = arith.constant 0 : index
    %0 = vector.load %arg2[%c0, %c0_0] : memref<15x15xf32, #tpu.memory_space<vmem>>, vector<15x15xf32>
    %c0_1 = arith.constant 0 : index
    %c0_2 = arith.constant 0 : index
    %1 = vector.load %arg1[%c0_1, %c0_2] : memref<15x8xf32, #tpu.memory_space<vmem>>, vector<15x8xf32>
    %cst = arith.constant dense<0.000000e+00> : vector<15x8xf32>
    %2 = tpu.matmul %0, %1, %cst {dimension_numbers = #tpu.dot_dimension_numbers<[1], [0], [0], [1], [0, 0, 1, 1], [], []>, precision = #tpu.contract_precision<fp32>} : vector<15x15xf32>, vector<15x8xf32>, vector<15x8xf32> -> vector<15x8xf32>
    %c0_3 = arith.constant 0 : index
    %c0_4 = arith.constant 0 : index
    %3 = vector.load %arg3[%c0_3, %c0_4] : memref<15x1xf32, #tpu.memory_space<vmem>>, vector<15x1xf32>
    %4 = vector.broadcast %3 : vector<15x1xf32> to vector<15x8xf32>
    %5 = arith.addf %2, %4 : vector<15x8xf32>
    %c0_5 = arith.constant 0 : index
    %c0_6 = arith.constant 0 : index
    %6 = vector.load %arg4[%c0_5, %c0_6] : memref<15x8xf32, #tpu.memory_space<vmem>>, vector<15x8xf32>
    tpu.vector_store %arg4[%c0_5, %c0_6], %5 {strides = array<i32>} : memref<15x8xf32, #tpu.memory_space<vmem>>, vector<15x8xf32>,
    return
  }
  func.func @transform_0(%arg0: i32) -> (i32, i32) {
    %c0_i32 = arith.constant 0 : i32
    %c0_i32_0 = arith.constant 0 : i32
    return %c0_i32, %arg0 : i32, i32
  }
  func.func @transform_1(%arg0: i32) -> (i32, i32) {
    %c0_i32 = arith.constant 0 : i32
    %c0_i32_0 = arith.constant 0 : i32
    %c0_i32_1 = arith.constant 0 : i32
    return %c0_i32, %c0_i32_0 : i32, i32
  }
  func.func @transform_2(%arg0: i32) -> (i32, i32) {
    %c0_i32 = arith.constant 0 : i32
    %c0_i32_0 = arith.constant 0 : i32
    %c0_i32_1 = arith.constant 0 : i32
    return %c0_i32, %c0_i32_0 : i32, i32
  }
  func.func @transform_3(%arg0: i32) -> (i32, i32) {
    %c0_i32 = arith.constant 0 : i32
    %c0_i32_0 = arith.constant 0 : i32
    return %c0_i32, %arg0 : i32, i32
  }
}

</mosaic_0001>

<bundles_post_ra>
// kernel: conv_model_forward.1
= control target key start
LH: loop header
LB: loop body
LE: loop exit
PB: predicated region body
PF: predicated region fallthrough
CT: control target
= control target key end

     0   :  { %vm37_vm0 = vcmask 1046528   ;;  %vm30_vm1 = vcmask 121856   ;;  %v619_v3 = vmov 0   ;;  %vm545_vm2 = vcmask 63488   ;;  %s664_s0 = inlined_call_operand.vmem [shape: f32[15,8], index: 0, kind: input, shape index: {}]   ;;  %s665_s1 = inlined_call_operand.vmem [shape: f32[15,15], index: 1, kind: input, shape index: {}]   ;;  %s666_s2 = inlined_call_operand.vmem [shape: f32[15,1], index: 2, kind: input, shape index: {}]   ;;  %s667_s3 = inlined_call_operand.vmem [shape: f32[15,8], index: 3, kind: output, shape index: {}]  }
   0x1   :  { %v17_v0 = vld [vmem:[%s664_s0 + $0x8] sm:$0x7f]  ;;  %v16_v1 = vld [vmem:[%s664_s0] sm:$0xff]  ;;  %618 = vset.pattern.permute.xlu0 %v619_v3  ;;  %vm543_vm3 = vcmask 64512  }
   0x2   :  { %v14_v2 = vld [vmem:[%s665_s1] sm:$0xff]  ;;  %v39_v4 = vsel %vm37_vm0, %v17_v0, 0  ;;  %v73_v5 = vand.u32 4294901760, %v16_v1  ;;  %v15_v6 = vld [vmem:[%s665_s1 + $0x8] sm:$0x7f] }
   0x3   :  { %v32_v7 = vsel %vm30_vm1, %v14_v2, 0  ;;  %v18_v8 = vld [vmem:[%s666_s2] sm:$0xff]  ;;  %v70_v9 = vand.u32 4294901760, %v39_v4  ;;  %v35_v10 = vsel %vm30_vm1, %v15_v6, 0  ;;  %v19_v14 = vld [vmem:[%s666_s2 + $0x8] sm:$0x7f] }
   0x4   :  { %v108_v11 = vand.u32 4294901760, %v32_v7  ;;  %22 = vperm.xlu0 %618, %v18_v8   ;;  %v118_v12 = vand.u32 4294901760, %v35_v10  ;;  %v165_v13 = vsub.f32 %v16_v1, %v73_v5 }
   0x5   :  { %575 = vmatprep.subr.mxu0 %v70_v9  ;;  %v158_v16 = vsub.f32 %v39_v4, %v70_v9 }
   0x6   :  { %v109_v15 = vsub.f32 %v32_v7, %v108_v11  ;;  %586 = vmatprep.mubr.f32.mxu1 %v108_v11  ;;  %576 = vmatpush3.msra.mxu0 %v70_v9  ;;  %v119_v17 = vsub.f32 %v35_v10, %v118_v12  ;;  %v166_v18 = vand.u32 4294901760, %v165_v13 }
   0x7   :  { %577 = vmatprep.subr.mxu0 %v73_v5  ;;  %v159_v20 = vand.u32 4294901760, %v158_v16 }
   0x8   :  { %v110_v19 = vand.u32 4294901760, %v109_v15  ;;  %27 = vperm.xlu0 %618, %v19_v14   ;;  %578 = vmatpush3.msra.mxu0 %v73_v5  ;;  %v120_v21 = vand.u32 4294901760, %v119_v17  ;;  %v167_v22 = vsub.f32 %v165_v13, %v166_v18 }
   0x9   :  { %v160_v24 = vsub.f32 %v158_v16, %v159_v20  ;;  %589 = vmatprep.subr.mxu0 %v158_v16 }
   0xa   :  { %v111_v23 = vsub.f32 %v109_v15, %v110_v19  ;;  %v121_v25 = vsub.f32 %v119_v17, %v120_v21  ;;  %v168_v28 = vand.u32 4294901760, %v167_v22 }
   0xb   :  { %v161_v27 = vand.u32 4294901760, %v160_v24 }
   0xc   :  { %v112_v26 = vand.u32 4294901760, %v111_v23  ;;  %v122_v29 = vand.u32 4294901760, %v121_v25 }
   0xd   :  { %582 = vmatprep.subr.mxu1 %v161_v27 }
   0xe   :  { %579 = vmatprep.mubr.f32.mxu0 %v112_v26  ;;  %583 = vmatpush3.msra.mxu1 %v161_v27 }
   0xf   :  { %580 = vmatmul.mubr.f32.vlgmr.msra.gmra.mxu0 %v122_v29  ;;  %584 = vmatprep.subr.mxu1 %v168_v28 }
  0x10   :  { %590 = vmatpush3.msra.mxu0 %v158_v16  ;;  %585 = vmatpush3.msra.mxu1 %v168_v28 }
  0x11   :  { %591 = vmatprep.subr.mxu0 %v165_v13  ;;  %587 = vmatmul.mubr.f32.vlgmr.msra.gmra.mxu1 %v118_v12 }
  0x12   :  { %592 = vmatpush3.msra.mxu0 %v165_v13  ;;  %593 = vmatprep.mubr.f32.mxu0 %v109_v15 }
  0x13   :  { %596 = vmatprep.subr.mxu1 %v70_v9  ;;  %594 = vmatmul.mubr.f32.vlgmr.msra.gmra.mxu0 %v119_v17 }
  0x14   :  { %597 = vmatpush3.msra.mxu1 %v70_v9  ;;  %603 = vmatprep.subr.mxu0 %v159_v20 }
  0x15   :  { %598 = vmatprep.subr.mxu1 %v73_v5  ;;  %604 = vmatpush3.msra.mxu0 %v159_v20 }
  0x16   :  { %599 = vmatpush3.msra.mxu1 %v73_v5  ;;  %600 = vmatprep.mubr.f32.mxu1 %v110_v19 }
  0x17   :  { %605 = vmatprep.subr.mxu0 %v166_v18  ;;  %601 = vmatmul.mubr.f32.vlgmr.msra.gmra.mxu1 %v120_v21 }
  0x18   :  { %606 = vmatpush3.msra.mxu0 %v166_v18  ;;  %607 = vmatprep.mubr.f32.mxu0 %v108_v11 }
  0x19   :  { %610 = vmatprep.subr.mxu1 %v70_v9  ;;  %608 = vmatmul.mubr.f32.vlgmr.msra.gmra.mxu0 %v118_v12 }
  0x1a   :  { %611 = vmatpush3.msra.mxu1 %v70_v9  ;;  %614 = vmatprep.mubr.f32.mxu1 %v108_v11 }
  0x1b   :  { %612 = vmatprep.subr.mxu1 %v73_v5 }
  0x1c   :  { %613 = vmatpush3.msra.mxu1 %v73_v5 }
  0x1d   :  { %615 = vmatmul.mubr.f32.vlgmr.msra.gmra.mxu1 %v118_v12 }
  0x7f   :  { %v23_v30 = vpop.permute.xlu0 %22 }
  0x83   :  { %v28_v31 = vpop.permute.xlu0 %27 }
  0xcf   :  { %v581_v32 = vpop.f32.mrf.mxu0 }
  0xd0   :  { %v125_v33 = vadd.f32 %v581_v32, %v28_v31 }
  0xd1   :  { %v114_v34 = vpop.f32.mrf.mxu0  ;;  %v588_v36 = vpop.f32.mrf.mxu1 }
  0xd2   :  { %v115_v35 = vadd.f32 %v114_v34, %v23_v30  ;;  %v212_v37 = vadd.f32 %v588_v36, %v125_v33 }
  0xd3   :  { %v595_v38 = vpop.f32.mrf.mxu0  ;;  %v205_v39 = vpop.f32.mrf.mxu1 }
  0xd4   :  { %v295_v40 = vadd.f32 %v595_v38, %v212_v37  ;;  %v206_v41 = vadd.f32 %v205_v39, %v115_v35 }
  0xd5   :  { %v287_v42 = vpop.f32.mrf.mxu0 }
  0xd6   :  { %v288_v43 = vadd.f32 %v287_v42, %v206_v41 }
  0xd7   :  { %v602_v44 = vpop.f32.mrf.mxu1 }
  0xd8   :  { %v378_v45 = vadd.f32 %v602_v44, %v295_v40 }
  0xd9   :  { %v609_v46 = vpop.f32.mrf.mxu0  ;;  %v369_v47 = vpop.f32.mrf.mxu1 }
  0xda   :  { %v461_v48 = vadd.f32 %v609_v46, %v378_v45  ;;  %v370_v49 = vadd.f32 %v369_v47, %v288_v43 }
  0xdb   :  { %v454_v50 = vpop.f32.mrf.mxu0 }
  0xdc   :  { %v455_v51 = vadd.f32 %v454_v50, %v370_v49 }
  0xdd   :  { %v616_v52 = vpop.f32.mrf.mxu1 }
  0xde   :  { %v540_v53 = vadd.f32 %v616_v52, %v461_v48 }
  0xdf   :  { %v533_v54 = vpop.f32.mrf.mxu1 }
  0xe0   :  { %546 = vst.msk [vmem:[%s667_s3 + $0x8] sm:$0x7f] %vm545_vm2, %v540_v53  ;;  %v534_v55 = vadd.f32 %v533_v54, %v455_v51 }
  0xe2   :  { %544 = vst.msk [vmem:[%s667_s3] sm:$0xff] %vm543_vm3, %v534_v55 }

</bundles_post_ra>
